<compile_context>
chip_gen: v6e
topology: v6e:2x2x1
jax: 0.10.0
libtpu: 0.0.40
codegen_flags: <defaults>
</compile_context>

<pallas_src>
import jax
import jax.numpy as jnp
from jax.experimental import pallas as pl
from jax.experimental.pallas import tpu as pltpu


# ----------------------------------------------------------------------------
# Pallas kernel: lane-dense sliding correlation for one frame tile.
#   band_ref : (Lk, Xr)  banded Toeplitz weights, band[i, r] = w[r - i]
#   x_ref    : (Xr, TF)  x windows, x[r, f] = x[f*hop + keep - delay + r]
#   est_ref  : (Lk, TF)  d_est rows [keep, L) for TF frames (batch-invariant)
# One MXU matmul per tile; frames live on lanes (TF is a multiple of 128) so
# both the x loads and the est stores are full, unmasked vector accesses.
# ----------------------------------------------------------------------------
def _corr_kernel(band_ref, x_ref, est_ref):
    est_ref[...] = jnp.dot(band_ref[...], x_ref[...],
                           preferred_element_type=jnp.float32)


def _round_up(a, m):
    return -(-a // m) * m


def _choose_frame_tile(F, xr_rows, out_rows):
    """Pick the lane tile (frames per block) and grid size.

    Keeps the double-buffered (x in + est out) blocks under ~24 MiB (safe on
    v7x's 64 MiB/TC, ample on v5e/v6e), caps the tile at round_up(F, 128) so
    padding can never exceed 127 lanes per tile, balances tiles to minimize
    padding, and prefers >=2 tiles for large F so both v7x cores get work.
    """
    lane_bytes = 2 * 4 * (xr_rows + out_rows)        # f32, double-buffered
    budget = 24 << 20
    f_up = _round_up(F, 128)
    tf_max = max(128, (budget // max(lane_bytes, 1)) // 128 * 128)
    tf_max = min(tf_max, f_up)
    if f_up > tf_max:
        n_t = -(-f_up // tf_max)
        tf = min(_round_up(-(-F // n_t), 128), tf_max)
    elif f_up >= 512:
        tf = _round_up(f_up // 2, 128)               # split for 2 TensorCores
    else:
        tf = f_up
    num_ft = -(-F // tf)
    return tf, num_ft, num_ft * tf


def _frame0_rows_est(x32, w_flat, t_lo, t_hi, delay):
    """est[t] = sum_k w[k] * x[t - delay + k] for frame-0 rows t in [t_lo, t_hi).

    Tiny (< framelen rows) XLA side path used for frame 0's head rows that the
    kernel (which only produces overlap-surviving rows) does not cover.
    """
    n = t_hi - t_lo
    if n <= 0:
        return jnp.zeros((0,), jnp.float32)
    filterlen = w_flat.shape[0]
    idx = (jnp.arange(n) + (t_lo - delay))[:, None] + jnp.arange(filterlen)[None, :]
    return x32[idx] @ w_flat


class BaseFilterPallas:
    def __init__(self, hop, framelen, filterlen, weights_delay=None,
                 weights_range=(-65535.0, 65535.0)):
        assert filterlen > 0
        assert hop > 0
        assert framelen >= hop
        assert framelen > filterlen
        assert weights_delay is None or 0 <= weights_delay < filterlen
        self.hop = hop
        self.framelen = framelen
        self.filterlen = filterlen
        self.weights_delay = (filterlen - 1 if weights_delay is None
                              else weights_delay)
        self.weights_range = weights_range
        # registered buffer 'w': zeros of shape (1, 1, filterlen)
        self.w = jnp.zeros((1, 1, filterlen), jnp.float32)

    # ------------------------------------------------------------------
    def _apply(self, d, x, w0):
        hop, framelen, filterlen = self.hop, self.framelen, self.filterlen
        delay = self.weights_delay
        assert d.ndim == 2 and x.ndim == 1
        B, N = d.shape
        assert x.shape[0] == N

        F = (N - framelen) // hop + 1
        L = framelen - filterlen            # per-frame output length
        keep = framelen - hop               # first overlap-surviving row (f >= 1)
        Lk = hop - filterlen                # rows per frame surviving the concat

        d32 = d.astype(jnp.float32)
        x32 = x.astype(jnp.float32)
        w_flat = w0.reshape(filterlen).astype(jnp.float32)

        # ---- degenerate configs: single frame or hop <= filterlen ----------
        # The torch overlap-concat then keeps frame 0 only; do it with the tiny
        # XLA side path (no kernel needed).
        if F <= 1 or Lk <= 0:
            hz = min(delay, L)
            est = _frame0_rows_est(x32, w_flat, delay, L, delay)   # (max(0, L-delay),)
            zeros_head = jnp.zeros((B, hz), jnp.float32)
            d_out = jnp.concatenate(
                [zeros_head, jnp.broadcast_to(est[None], (B, L - hz))], axis=-1)
            e_out = jnp.concatenate(
                [zeros_head, d32[:, delay:L] - est[None]], axis=-1)
            return d_out, e_out

        # ---- batch-invariant estimate for the kept rows (Pallas kernel) ----
        Xr = Lk + filterlen - 1
        Xr_pad = _round_up(Xr, 8)           # keep sublane extent 8-aligned

        # x window matrix, lane dense (frames on lanes):
        #   x_win[r, f] = x[f*hop + keep - delay + r]
        lpad = max(0, delay - keep)
        base = keep - delay + lpad          # >= 0
        need = base + Xr_pad + hop * (F - 1)
        rpad = max(0, need - (N + lpad))
        xp = jnp.pad(x32, (lpad, rpad))
        idx = base + jnp.arange(Xr_pad)[:, None] + hop * jnp.arange(F)[None, :]
        x_win = xp[idx]                                        # (Xr_pad, F), ~N floats

        # banded Toeplitz weights: band[i, r] = w[r - i] inside the band, 0 outside;
        # rows whose absolute time index keep+i < delay are forced to zero.
        ii = jnp.arange(Lk)[:, None]
        rr = jnp.arange(Xr_pad)[None, :]
        kk = rr - ii
        band = jnp.where((kk >= 0) & (kk < filterlen),
                         w_flat[jnp.clip(kk, 0, filterlen - 1)], 0.0)
        if keep < delay:                    # rare corner (hop close to framelen)
            band = jnp.where((keep + ii) >= delay, band, 0.0)

        TF, num_ft, F_pad = _choose_frame_tile(F, Xr_pad, Lk)
        if F_pad != F:
            x_win = jnp.pad(x_win, ((0, 0), (0, F_pad - F)))

        est_T = pl.pallas_call(
            _corr_kernel,
            out_shape=jax.ShapeDtypeStruct((Lk, F_pad), jnp.float32),
            grid=(num_ft,),
            in_specs=[
                pl.BlockSpec((Lk, Xr_pad), lambda ft: (0, 0)),   # band: resident
                pl.BlockSpec((Xr_pad, TF), lambda ft: (0, ft)),  # x windows
            ],
            out_specs=pl.BlockSpec((Lk, TF), lambda ft: (0, ft)),
            compiler_params=pltpu.CompilerParams(
                dimension_semantics=("parallel",),
                vmem_limit_bytes=48 << 20,
            ),
        )(band, x_win)

        est = jnp.transpose(est_T[:, :F])          # (F, Lk) batch-invariant, tiny
        est_flat = est.reshape(F * Lk)

        # ---- frame-0 head rows [delay, keep): tiny XLA side path ------------
        hz = min(delay, keep)
        head_est = _frame0_rows_est(x32, w_flat, delay, keep, delay)

        # ---- output assembly (fused elementwise + concat) -------------------
        # Kept d samples are a contiguous slice+reshape of d (no unfold, no
        # gather); d is read exactly once here and the result is written
        # directly in the de-overlapped flat layout.
        d_kept = d32[:, keep:keep + F * hop].reshape(B, F, hop)[:, :, :Lk]
        e_kept = d_kept - est[None]
        if keep < delay:                    # e is zero where t < delay
            e_kept = jnp.where(
                (keep + jnp.arange(Lk))[None, None, :] >= delay, e_kept, 0.0)

        zeros_head = jnp.zeros((B, hz), jnp.float32)
        d_out = jnp.concatenate(
            [zeros_head,
             jnp.broadcast_to(head_est[None], (B, keep - hz)),
             jnp.broadcast_to(est_flat[None], (B, F * Lk))], axis=-1)
        e_out = jnp.concatenate(
            [zeros_head,
             d32[:, delay:keep] - head_est[None],
             e_kept.reshape(B, F * Lk)], axis=-1)
        return d_out, e_out

    # ------------------------------------------------------------------
    def __call__(self, d, x):
        # forward() calls reset(): weights are zeroed before processing
        self.w = jnp.zeros((1, 1, self.filterlen), jnp.float32)
        return self._apply(d, x, self.w)


# ----------------------------------------------------------------------------
# Pure-JAX literal transcription of the torch forward loop (reference).
# ----------------------------------------------------------------------------
def _reference_forward(d, x, hop, framelen, filterlen, delay, w0):
    B, N = d.shape
    F = (N - framelen) // hop + 1
    L = framelen - filterlen
    idxs = jnp.arange(F)[:, None] * hop + jnp.arange(framelen)[None, :]
    d_u = d[:, idxs].astype(jnp.float32)                 # (B, F, framelen)
    x_u = x[idxs].astype(jnp.float32)[None]              # (1, F, framelen)
    w = jnp.tile(w0.astype(jnp.float32), (B, F, 1))
    d_est = jnp.zeros((B, F, L), jnp.float32)
    e = jnp.zeros((B, F, L), jnp.float32)
    for i in range(delay, L):
        xs = x_u[:, :, i - delay:i - delay + filterlen]
        est = jnp.einsum('ijk,pjk->ij', w, xs)
        d_est = d_est.at[:, :, i].set(est)
        e = e.at[:, :, i].set(d_u[:, :, i] - est)
    d_out = jnp.concatenate(
        [d_est[:, 0, :], d_est[:, 1:, framelen - hop:].reshape(B, -1)], -1)
    e_out = jnp.concatenate(
        [e[:, 0, :], e[:, 1:, framelen - hop:].reshape(B, -1)], -1)
    return d_out, e_out


if __name__ == "__main__":
    configs = [
        dict(B=2, N=64, hop=16, framelen=32, filterlen=8, delay=None),  # default
        dict(B=2, N=64, hop=16, framelen=32, filterlen=8, delay=3),     # custom delay
        dict(B=2, N=96, hop=32, framelen=32, filterlen=8, delay=None),  # no overlap (keep < delay)
    ]
    key = jax.random.PRNGKey(0)
    for cfg in configs:
        key, kd, kx, kw = jax.random.split(key, 4)
        B, N = cfg["B"], cfg["N"]
        d = jax.random.normal(kd, (B, N), dtype=jnp.float32)
        x = jax.random.normal(kx, (N,), dtype=jnp.float32)

        filt = BaseFilterPallas(hop=cfg["hop"], framelen=cfg["framelen"],
                                filterlen=cfg["filterlen"],
                                weights_delay=cfg["delay"])

        # 1) module semantics: forward() resets weights to zero -> exact check
        d_est, e = filt(d, x)
        jax.block_until_ready((d_est, e))
        d_ref, e_ref = _reference_forward(
            d, x, cfg["hop"], cfg["framelen"], cfg["filterlen"],
            filt.weights_delay, jnp.zeros((1, 1, cfg["filterlen"]), jnp.float32))
        assert d_est.shape == d_ref.shape and e.shape == e_ref.shape
        assert jnp.allclose(d_est, d_ref, atol=1e-6)
        assert jnp.allclose(e, e_ref, atol=1e-6)

        # 2) kernel math with non-zero weights.  Inputs are quantized to a few
        #    mantissa bits so products/sums are exact under both full-f32 and
        #    bf16-pass MXU precision -> tight tolerance, precision-independent.
        xq = jnp.clip(jnp.round(x * 4.0) / 4.0, -2.0, 2.0)
        dq = jnp.clip(jnp.round(d * 4.0) / 4.0, -2.0, 2.0)
        w0 = jax.random.normal(kw, (1, 1, cfg["filterlen"]), dtype=jnp.float32)
        w0 = jnp.clip(jnp.round(w0 * 4.0) / 4.0, -2.0, 2.0)
        d_est2, e2 = filt._apply(dq, xq, w0)
        jax.block_until_ready((d_est2, e2))
        d_ref2, e_ref2 = _reference_forward(
            dq, xq, cfg["hop"], cfg["framelen"], cfg["filterlen"],
            filt.weights_delay, w0)
        assert jnp.allclose(d_est2, d_ref2, atol=1e-5)
        assert jnp.allclose(e2, e_ref2, atol=1e-5)

    print("KERNEL_OK")
</pallas_src>

<mosaic_0001>
module attributes {stable_mosaic.version = 11 : i64} {
  func.func @_corr_kernel(%arg0: i32, %arg1: memref<8x16xf32, #tpu.memory_space<vmem>>, %arg2: memref<16x128xf32, #tpu.memory_space<vmem>>, %arg3: memref<8x128xf32, #tpu.memory_space<vmem>>) attributes {dimension_semantics = [#tpu.dimension_semantics<parallel>], iteration_bounds = array<i64: 1>, scalar_prefetch = 0 : i64, scratch_operands = 0 : i64, tpu.core_type = #tpu.core_type<tc>, window_params = [{pipeline_mode = #tpu.pipeline_mode<synchronous>, transform_indices = @transform_0, window_bounds = array<i64: 8, 16>}, {transform_indices = @transform_1, window_bounds = array<i64: 16, 128>}, {transform_indices = @transform_2, window_bounds = array<i64: 8, 128>}]} {
    %c0 = arith.constant 0 : index
    %c0_0 = arith.constant 0 : index
    %0 = vector.load %arg1[%c0, %c0_0] : memref<8x16xf32, #tpu.memory_space<vmem>>, vector<8x16xf32>
    %c0_1 = arith.constant 0 : index
    %c0_2 = arith.constant 0 : index
    %1 = vector.load %arg2[%c0_1, %c0_2] : memref<16x128xf32, #tpu.memory_space<vmem>>, vector<16x128xf32>
    %cst = arith.constant dense<0.000000e+00> : vector<8x128xf32>
    %2 = tpu.matmul %0, %1, %cst {dimension_numbers = #tpu.dot_dimension_numbers<[1], [0], [0], [1], [0, 0, 1, 1], [], []>} : vector<8x16xf32>, vector<16x128xf32>, vector<8x128xf32> -> vector<8x128xf32>
    %c0_3 = arith.constant 0 : index
    %c0_4 = arith.constant 0 : index
    %3 = vector.load %arg3[%c0_3, %c0_4] : memref<8x128xf32, #tpu.memory_space<vmem>>, vector<8x128xf32>
    tpu.vector_store %arg3[%c0_3, %c0_4], %2 {strides = array<i32>} : memref<8x128xf32, #tpu.memory_space<vmem>>, vector<8x128xf32>,
    return
  }
  func.func @transform_0(%arg0: i32) -> (i32, i32) {
    %c0_i32 = arith.constant 0 : i32
    %c0_i32_0 = arith.constant 0 : i32
    %c0_i32_1 = arith.constant 0 : i32
    return %c0_i32, %c0_i32_0 : i32, i32
  }
  func.func @transform_1(%arg0: i32) -> (i32, i32) {
    %c0_i32 = arith.constant 0 : i32
    %c0_i32_0 = arith.constant 0 : i32
    return %c0_i32, %arg0 : i32, i32
  }
  func.func @transform_2(%arg0: i32) -> (i32, i32) {
    %c0_i32 = arith.constant 0 : i32
    %c0_i32_0 = arith.constant 0 : i32
    return %c0_i32, %arg0 : i32, i32
  }
}

</mosaic_0001>

<bundles_post_ra>
// kernel: tpu_custom_call.1
= control target key start
LH: loop header
LB: loop body
LE: loop exit
PB: predicated region body
PF: predicated region fallthrough
CT: control target
= control target key end

     0   :  { %7 = vsyncpa [#allocation3], 0  ;;  %s247_s0 = inlined_call_operand.hbm [shape: f32[8,16], index: 0, kind: input, shape index: {}]   ;;  %s248_s1 = inlined_call_operand.hbm [shape: f32[16,128], index: 1, kind: input, shape index: {}]   ;;  %s249_s2 = inlined_call_operand.hbm [shape: f32[8,128], index: 2, kind: output, shape index: {}]  }
   0x1   :  { %8 = vsyncpa [#allocation6], 0 }
   0x2   :  { %9 = vsyncpa [#allocation4], 0  ;;  %s216_s9 = smov [#allocation2]   ;;  %s217_s11 = smov [#allocation5]  }
   0x3   :  { %s16_s10 = sshll.u32 %s216_s9, 4  ;;  %s25_s12 = sshll.u32 %s217_s11, 4  ;;  %s17_s10 = int_to_ptr.vmem [resolvable:$true] %s16_s10  ;;  %s26_s12 = int_to_ptr.vmem [resolvable:$true] %s25_s12 }
   0x4   :  { %s158_s13 = scalar_lea.vmem %s17_s10, 128  ;;  %p163_p1 = scmp.lt.s32.totalorder %s17_s10, %s17_s10 }
   0x5   :  { %p159_p0 = scmp.ne.s32.totalorder %s17_s10, %s158_s13  ;;  %p164_p2 = scmp.lt.s32.totalorder %s158_s13, %s158_s13 }
   0x7   :  { %p165_p3 = por %p164_p2, %p163_p1 }
   0x9   :  { %p166_p4 = pnand %p165_p3, %p159_p0 }
   0xb   :  { %169 = shalt.err (!%p166_p4)
}
   0xc   :  { %19 = dma.hbm_to_vmem [thread:$0]  %s247_s0, 128, %s17_s10, [#allocation3]  }
   0xd   :  { %s178_s16 = scalar_lea.vmem %s26_s12, 256  ;;  %p183_p6 = scmp.lt.s32.totalorder %s26_s12, %s26_s12 }
   0xe   :  { %p179_p5 = scmp.ne.s32.totalorder %s26_s12, %s178_s16  ;;  %p184_p7 = scmp.lt.s32.totalorder %s178_s16, %s178_s16 }
  0x10   :  { %p185_p8 = por %p184_p7, %p183_p6 }
  0x12   :  { %p186_p9 = pnand %p185_p8, %p179_p5 }
  0x14   :  { %189 = shalt.err (!%p186_p9)
}
  0x15   :  { %s218_s17 = smov 128   ;;  %s219_s18 = smov 8  }
  0x16   :  { %31 = dma.hbm_to_vmem [thread:$0]  %s248_s1, 256, %s26_s12, [#allocation6], %s218_s17, %s218_s17, %s219_s18  }
  0x17   :  { %210 = dma.done.wait [#allocation3], 128  }
  0x18   :  { %211 = vsyncadd [#allocation3], 4294967168 }
  0x19   :  { %212 = dma.done.wait [#allocation6], 256  }
  0x1a   :  { %213 = vsyncadd [#allocation6], 4294967040  ;;  %v220_v0 = vmov 0.0   ;;  %vm221_vm0 = vmmov 0   ;;  %v40_v1 = vld [vmem:[#allocation5 + $0x8] sm:$0xff]  ;;  %v39_v2 = vld [vmem:[#allocation5] sm:$0xff] }
  0x1b   :  { %136 = vmatprep.subr.mxu0 %v220_v0  ;;  %140 = vmatprep.mubr.msk.f32.mxu0 %vm221_vm0, %v220_v0  ;;  %v38_v3 = vld [vmem:[#allocation2] sm:$0xff]  ;;  %vm41_vm1 = vcmask 130048   ;;  %s222_s0 = smov [#allocation7]  }
  0x1c   :  { %137 = vmatpush3.msra.mxu0 %v40_v1  ;;  %s122_s21 = sshll.u32 %s222_s0, 4  ;;  %s123_s21 = int_to_ptr.vmem [resolvable:$true] %s122_s21 }
  0x1d   :  { %138 = vmatprep.subr.mxu0 %v220_v0  ;;  %s190_s1 = scalar_lea.vmem %s123_s21, 128  ;;  %p195_p11 = scmp.lt.s32.totalorder %s123_s21, %s123_s21 }
  0x1e   :  { %139 = vmatpush3.msra.mxu0 %v39_v2  ;;  %p191_p10 = scmp.ne.s32.totalorder %s123_s21, %s190_s1  ;;  %p196_p12 = scmp.lt.s32.totalorder %s190_s1, %s190_s1 }
  0x1f   :  { %141 = vmatmul.mubr.msk.f32.vlgmr.msra.gmra.mxu0 %vm41_vm1, %v38_v3 }
  0x20   :  { %p197_p13 = por %p196_p12, %p195_p11 }
  0x22   :  { %p198_p0 = pnand %p197_p13, %p191_p10 }
  0xdf   :  { %v111_v4 = vpop.f32.mrf.mxu0 }
  0xe0   :  { %115 = vst [vmem:[#allocation7] sm:$0xff] %v111_v4 }
  0xe1   :  { %v142_v5 = vpop.f32.mrf.mxu0 }
  0xe2   :  { %201 = shalt.err (!%p198_p0)
}
  0xe3   :  { %125 = dma.vmem_to_hbm [thread:$0]  %s123_s21, 128, %s249_s2, [#allocation4]  }
  0xe4   :  { %214 = dma.done.wait [#allocation4], 128  }
  0xe5   :  { %215 = vsyncadd [#allocation4], 4294967168 }
  0xe6   :  { %129 = vsyncpa [#allocation3], 1 }
  0xe7   :  { %130 = vsyncpa [#allocation6], 1 }
  0xe8   :  { %131 = vsyncpa [#allocation4], 1 }

</bundles_post_ra>
